<compile_context>
chip_gen: v5e
topology: v5e:2x2
jax: 0.10.0
libtpu: 0.0.40
codegen_flags: <defaults>
</compile_context>

<pallas_src>
import math
import functools

import jax
import jax.numpy as jnp
from jax import lax
from jax.experimental import pallas as pl
from jax.experimental.pallas import tpu as pltpu

LN_EPS = 1e-12  # BERT LayerNorm eps


def _layernorm(x, gamma, beta, eps=LN_EPS):
    mu = jnp.mean(x, axis=-1, keepdims=True)
    var = jnp.mean(jnp.square(x - mu), axis=-1, keepdims=True)
    return (x - mu) * lax.rsqrt(var + eps) * gamma + beta


# ---------------------------------------------------------------------------
# VMEM limit helpers
# ---------------------------------------------------------------------------
@functools.lru_cache(maxsize=None)
def _vmem_cap_bytes():
    """~3/4 of the physical per-core VMEM (64 MiB on v7x, 128 MiB on v5e/v6e)."""
    try:
        cap = int(getattr(pltpu.get_tpu_info(), "vmem_capacity_bytes", 0) or 0)
        if cap > 0:
            return (cap * 3) // 4
    except Exception:
        pass
    return 96 << 20  # fallback (valid for v5e/v6e) when the query is unavailable


def _clamp_vmem(nbytes):
    return int(min(max(nbytes, 32 << 20), _vmem_cap_bytes()))


# ---------------------------------------------------------------------------
# BlockSpec builders: tile-varying specs are double-buffered by the pipeline;
# constant-index weight specs are single-buffered (pl.Buffered(1)) when the
# running jax supports the pipeline_mode kwarg.
# ---------------------------------------------------------------------------
_BUFFERED_OK = {"flag": hasattr(pl, "Buffered")}


def _run_with_buffered_fallback(run):
    """Try single-buffered constant weights; fall back to default buffering."""
    if _BUFFERED_OK["flag"]:
        try:
            return run(True)
        except Exception:
            _BUFFERED_OK["flag"] = False  # unsupported on this jax -> never retry
    return run(False)


def _spec_builders(use_buffered):
    vmem_bytes = [0]

    def tiled(shape, dtype, index_map):
        vmem_bytes[0] += 2 * math.prod(shape) * jnp.dtype(dtype).itemsize
        return pl.BlockSpec(shape, index_map)

    def const(shape, dtype):
        nbuf = 1 if use_buffered else 2
        vmem_bytes[0] += nbuf * math.prod(shape) * jnp.dtype(dtype).itemsize
        index_map = lambda *_: (0,) * len(shape)
        if use_buffered:
            return pl.BlockSpec(shape, index_map, pipeline_mode=pl.Buffered(1))
        return pl.BlockSpec(shape, index_map)

    return tiled, const, vmem_bytes


# ---------------------------------------------------------------------------
# Kernel 1: embedding sum + the two LayerNorms (shared gamma/beta, see header).
# Inputs are (we+pe+te) pre-summed by XLA's fused gathers, plus ctx embedding.
# TODO(synk): move the table gathers in-kernel via PrefetchScalarGridSpec to cut
#             the remaining embed-stage HBM round trip.
# ---------------------------------------------------------------------------
def embed_kernel(sum3_ref, ce_ref, g_ref, b_ref, out_ref):
    s3 = sum3_ref[0].astype(jnp.float32)           # (t, H)
    c = ce_ref[0].astype(jnp.float32)
    g = g_ref[0]
    b = b_ref[0]
    e1 = _layernorm(s3, g, b)                      # bert.embeddings.LayerNorm
    e2 = _layernorm(e1 + c, g, b)                  # self.layer_norm (same weights)
    out_ref[0] = e2.astype(out_ref.dtype)


def embed_ln(sum3, ce, g, b, *, seq_tile):
    B, S, H = sum3.shape
    tq = min(seq_tile, S)
    assert S % tq == 0
    return pl.pallas_call(
        embed_kernel,
        out_shape=jax.ShapeDtypeStruct((B, S, H), jnp.float32),
        grid=(B, S // tq),
        in_specs=[pl.BlockSpec((1, tq, H), lambda bb, s: (bb, s, 0)),
                  pl.BlockSpec((1, tq, H), lambda bb, s: (bb, s, 0)),
                  pl.BlockSpec((1, H), lambda bb, s: (0, 0)),
                  pl.BlockSpec((1, H), lambda bb, s: (0, 0))],
        out_specs=pl.BlockSpec((1, tq, H), lambda bb, s: (bb, s, 0)),
        compiler_params=pltpu.CompilerParams(
            dimension_semantics=("parallel", "parallel")),
    )(sum3, ce, g, b)


# ---------------------------------------------------------------------------
# Kernel 2: fused K/V projection (bf16 MXU), bf16 outputs.
# Q is NOT produced here (computed inside the attention kernel instead).
# ---------------------------------------------------------------------------
def kv_kernel(x_ref, wkv_ref, bkv_ref, k_ref, v_ref):
    x = x_ref[0].astype(jnp.bfloat16)                                   # (t, H)
    kv = jnp.dot(x, wkv_ref[...],
                 preferred_element_type=jnp.float32) + bkv_ref[0]       # (t, 2H) f32
    H = k_ref.shape[-1]
    k_ref[0] = kv[:, :H].astype(k_ref.dtype)                            # bf16 out
    v_ref[0] = kv[:, H:].astype(v_ref.dtype)                            # bf16 out


def kv_proj(x, wkv, bkv, *, seq_tile):
    B, S, H = x.shape
    tq = min(seq_tile, S)
    assert S % tq == 0

    def run(use_buffered):
        tiled, const, vmem_bytes = _spec_builders(use_buffered)
        in_specs = [tiled((1, tq, H), x.dtype, lambda b, s: (b, s, 0)),
                    const((H, 2 * H), wkv.dtype),
                    const((1, 2 * H), bkv.dtype)]
        out_specs = tuple(tiled((1, tq, H), jnp.bfloat16, lambda b, s: (b, s, 0))
                          for _ in range(2))
        # temporaries: bf16 x copy + (t, 2H) f32 intermediate
        scratch_bytes = tq * H * 2 + tq * 2 * H * 4
        vmem = _clamp_vmem(vmem_bytes[0] + scratch_bytes + (4 << 20))
        return pl.pallas_call(
            kv_kernel,
            out_shape=tuple(jax.ShapeDtypeStruct((B, S, H), jnp.bfloat16)
                            for _ in range(2)),
            grid=(B, S // tq),
            in_specs=in_specs,
            out_specs=out_specs,
            compiler_params=pltpu.CompilerParams(
                dimension_semantics=("parallel", "parallel"),
                vmem_limit_bytes=vmem),
        )(x, wkv, bkv)

    return _run_with_buffered_fallback(run)


# ---------------------------------------------------------------------------
# Kernel 3: Q projection + attention (full-S bf16 keys/values, query tile) +
# output projection + residual/LN + FFN + residual/LN.
# Optionally also the start/end logits (last layer).
# ---------------------------------------------------------------------------
def attn_ffn_kernel(*refs, num_heads, head_dim, compute_logits):
    if compute_logits:
        (x_ref, wq_ref, bq_ref, k_ref, v_ref, mask_ref,
         wo_ref, bo_ref, ln1g_ref, ln1b_ref,
         w1_ref, b1_ref, w2_ref, b2_ref, ln2g_ref, ln2b_ref, vecs_ref,
         out_ref, logits_ref, ctx_ref) = refs
    else:
        (x_ref, wq_ref, bq_ref, k_ref, v_ref, mask_ref,
         wo_ref, bo_ref, ln1g_ref, ln1b_ref,
         w1_ref, b1_ref, w2_ref, b2_ref, ln2g_ref, ln2b_ref,
         out_ref, ctx_ref) = refs
        vecs_ref = logits_ref = None

    x = x_ref[0]                                   # (tq, H) f32 residual input
    # Q computed in-kernel; 1/sqrt(dh) is already folded into Wq / bq.
    q = (jnp.dot(x.astype(jnp.bfloat16), wq_ref[...],
                 preferred_element_type=jnp.float32) + bq_ref[0]).astype(jnp.bfloat16)
    k = k_ref[0]                                   # (S, H) bf16 (no cast pass)
    v = v_ref[0]                                   # (S, H) bf16
    mask = mask_ref[0].astype(jnp.float32)         # (1, S) additive per key
    # NOTE: the reference module adds the *raw* 0/1 attention_mask (unsqueeze(1))
    # to the attention scores; reproduced verbatim.

    def head_attn(off):
        qh = q[:, off:off + head_dim]              # (tq, dh)
        kh = k[:, off:off + head_dim]              # (S, dh)
        vh = v[:, off:off + head_dim]              # (S, dh)
        s = lax.dot_general(qh, kh, (((1,), (1,)), ((), ())),
                            preferred_element_type=jnp.float32)          # (tq, S)
        s = s + mask
        s = s - jnp.max(s, axis=-1, keepdims=True)
        p = jnp.exp(s)
        # approx reciprocal runs on the EUP slot; ~1e-3 rel err vs exact divide.
        p = p * pl.reciprocal(jnp.sum(p, axis=-1, keepdims=True), approx=True)
        return jnp.dot(p.astype(jnp.bfloat16), vh,
                       preferred_element_type=jnp.float32)                # (tq, dh)

    # Heads processed in pairs: each iteration stores one (tq, 2*dh) bf16 slab
    # (full 128-lane unmasked store at dh=64) into the bf16 ctx scratch, which
    # feeds the single fused (tq,H)@(H,H) output projection directly.
    # TODO(synk): switch to lax.fori_loop over pairs with pl.ds offsets to bound
    #             live ranges at very large head counts.
    for h0 in range(0, num_heads, 2):
        lo = h0 * head_dim
        hi = min(h0 + 2, num_heads) * head_dim
        parts = [head_attn(off) for off in range(lo, hi, head_dim)]
        slab = parts[0] if len(parts) == 1 else jnp.concatenate(parts, axis=-1)
        ctx_ref[:, lo:hi] = slab.astype(jnp.bfloat16)

    attn = jnp.dot(ctx_ref[...], wo_ref[...],
                   preferred_element_type=jnp.float32) + bo_ref[0]
    h1 = _layernorm(x + attn, ln1g_ref[0], ln1b_ref[0])

    # TODO(synk): tile the FFN over the intermediate dim (inter-chunk loop with
    #             an f32 accumulator) for v7x at very large intermediate sizes.
    f = jnp.dot(h1.astype(jnp.bfloat16), w1_ref[...],
                preferred_element_type=jnp.float32) + b1_ref[0]
    f = jax.nn.gelu(f, approximate=False)          # BERT exact (erf) GELU
    f2 = jnp.dot(f.astype(jnp.bfloat16), w2_ref[...],
                 preferred_element_type=jnp.float32) + b2_ref[0]

    out = _layernorm(h1 + f2, ln2g_ref[0], ln2b_ref[0])
    out_ref[0] = out.astype(out_ref.dtype)

    if compute_logits:
        # (2, H) . (tq, H)^T -> (2, tq): sequence tile stays on the lane axis.
        lg = lax.dot_general(vecs_ref[...], out.astype(jnp.bfloat16),
                             (((1,), (1,)), ((), ())),
                             preferred_element_type=jnp.float32)
        logits_ref[0, 0] = lg.astype(logits_ref.dtype)


def attn_ffn_layer(x, k, v, mask_add, lp, *, n_heads, seq_tile, vecs=None):
    B, S, H = x.shape
    head_dim = H // n_heads
    tq = min(seq_tile, S)
    assert S % tq == 0
    n_sq = S // tq
    inter = lp["w1"].shape[1]
    compute_logits = vecs is not None

    kernel = functools.partial(attn_ffn_kernel, num_heads=n_heads,
                               head_dim=head_dim, compute_logits=compute_logits)

    def run(use_buffered):
        tiled, const, vmem_bytes = _spec_builders(use_buffered)
        in_specs = [
            tiled((1, tq, H), x.dtype, lambda b, s: (b, s, 0)),          # residual x
            const((H, H), lp["wq"].dtype), const((1, H), lp["bq"].dtype),  # Wq, bq (pre-scaled)
            tiled((1, S, H), k.dtype, lambda b, s: (b, 0, 0)),           # K full-S bf16
            tiled((1, S, H), v.dtype, lambda b, s: (b, 0, 0)),           # V full-S bf16
            tiled((1, 1, S), mask_add.dtype, lambda b, s: (b, 0, 0)),    # additive mask
            const((H, H), lp["wo"].dtype), const((1, H), lp["bo"].dtype),
            const((1, H), lp["ln1_g"].dtype), const((1, H), lp["ln1_b"].dtype),
            const((H, inter), lp["w1"].dtype), const((1, inter), lp["b1"].dtype),
            const((inter, H), lp["w2"].dtype), const((1, H), lp["b2"].dtype),
            const((1, H), lp["ln2_g"].dtype), const((1, H), lp["ln2_b"].dtype),
        ]
        args = [x, lp["wq"], lp["bq"], k, v, mask_add,
                lp["wo"], lp["bo"], lp["ln1_g"], lp["ln1_b"],
                lp["w1"], lp["b1"], lp["w2"], lp["b2"], lp["ln2_g"], lp["ln2_b"]]
        out_shapes = [jax.ShapeDtypeStruct((B, S, H), jnp.float32)]
        out_specs = [tiled((1, tq, H), jnp.float32, lambda b, s: (b, s, 0))]
        if compute_logits:
            in_specs.append(const((2, H), vecs.dtype))
            args.append(vecs)
            out_shapes.append(jax.ShapeDtypeStruct((B, n_sq, 2, tq), jnp.float32))
            out_specs.append(tiled((1, 1, 2, tq), jnp.float32,
                                   lambda b, s: (b, s, 0, 0)))

        # In-kernel temporaries: per-head-pair f32 scores/probs, q (f32+bf16),
        # FFN intermediate (f32 + bf16 copy), LN/residual temps + ctx scratch.
        scratch_bytes = (tq * H * 2                 # ctx scratch (bf16)
                         + 4 * tq * S * 4           # score / prob temporaries
                         + tq * inter * 6           # FFN intermediate
                         + 8 * tq * H * 4)          # q / h1 / residual temps
        vmem = _clamp_vmem(vmem_bytes[0] + scratch_bytes + (4 << 20))

        return pl.pallas_call(
            kernel,
            out_shape=tuple(out_shapes),
            grid=(B, n_sq),
            in_specs=in_specs,
            out_specs=tuple(out_specs),
            scratch_shapes=[pltpu.VMEM((tq, H), jnp.bfloat16)],
            compiler_params=pltpu.CompilerParams(
                # Batch axis parallel only: on v7x's two TensorCores this keeps
                # each core's full-S K/V HBM fetch unique (sharding the s axis
                # would duplicate it).  No effect on single-TC v5e/v6e.
                dimension_semantics=("parallel", "arbitrary"),
                vmem_limit_bytes=vmem),
        )(*args)

    outs = _run_with_buffered_fallback(run)
    if compute_logits:
        return outs[0], outs[1]
    return outs[0], None


# ---------------------------------------------------------------------------
# Wrappers / glue
# ---------------------------------------------------------------------------
def _prep_layer(lp, *, n_heads):
    """bf16 weights at the pallas_call boundary.

    1/sqrt(head_dim) is folded into Wq / bq (done once, removes the per-tile
    scale multiply); K/V projections are fused into one (H, 2H) matrix.
    """
    H = lp["wq"].shape[0]
    scale = 1.0 / math.sqrt(H // n_heads)
    return dict(
        wq=(lp["wq"] * scale).astype(jnp.bfloat16),
        bq=lp["bq"] * scale,
        wkv=jnp.concatenate([lp["wk"], lp["wv"]], axis=1).astype(jnp.bfloat16),
        bkv=jnp.concatenate([lp["bk"], lp["bv"]], axis=1),
        wo=lp["wo"].astype(jnp.bfloat16), bo=lp["bo"],
        ln1_g=lp["ln1_g"], ln1_b=lp["ln1_b"],
        w1=lp["w1"].astype(jnp.bfloat16), b1=lp["b1"],
        w2=lp["w2"].astype(jnp.bfloat16), b2=lp["b2"],
        ln2_g=lp["ln2_g"], ln2_b=lp["ln2_b"],
    )


def cross_entropy(logits, targets):
    logz = jax.nn.logsumexp(logits, axis=-1)
    gold = jnp.take_along_axis(logits, targets[:, None], axis=-1)[:, 0]
    return jnp.mean(logz - gold)


def free_slot_head_forward(params, input_ids, token_type_ids, context_ids,
                           attention_mask, start_positions=None, end_positions=None,
                           *, n_heads, seq_tile=256):
    # seq_tile: 256-512 recommended on v5e/v6e when S allows; 128-256 on v7x.
    B, S = input_ids.shape
    H = params["word_emb"].shape[1]
    tq = min(seq_tile, S)
    # bf16 K/V tiles need tq to be a multiple of 16 (packed sublanes) unless
    # the tile spans the whole sequence.
    assert S % tq == 0 and (tq % 16 == 0 or tq == S) and tq % 8 == 0

    # Glue: embedding table gathers (XLA fuses gather+add); only two (B,S,H)
    # intermediates are materialized for the embed kernel.
    sum3 = (jnp.take(params["word_emb"], input_ids, axis=0)
            + params["pos_emb"][None, :S, :]
            + jnp.take(params["type_emb"], token_type_ids, axis=0))
    ce = jnp.take(params["ctx_emb"], context_ids, axis=0)

    x = embed_ln(sum3, ce, params["emb_ln_g"], params["emb_ln_b"], seq_tile=tq)

    # Additive attention mask exactly as the reference (raw 0/1, unsqueeze(1)).
    mask_add = attention_mask.astype(jnp.float32).reshape(B, 1, S)

    vecs = jnp.stack([params["start_vec"], params["end_vec"]], axis=0).astype(jnp.bfloat16)

    n_layers = len(params["layers"])
    logits4 = None
    for li, lp in enumerate(params["layers"]):
        lpp = _prep_layer(lp, n_heads=n_heads)
        k, v = kv_proj(x, lpp["wkv"], lpp["bkv"], seq_tile=tq)
        last = (li == n_layers - 1)
        x, logits4 = attn_ffn_layer(x, k, v, mask_add, lpp, n_heads=n_heads,
                                    seq_tile=tq, vecs=vecs if last else None)

    # (B, n_sq, 2, tq) -> (B, 2, S): layout plumbing only (logits are tiny).
    n_sq = S // tq
    logits = jnp.transpose(logits4, (0, 2, 1, 3)).reshape(B, 2, S)
    start_logits = logits[:, 0, :]
    end_logits = logits[:, 1, :]

    loss = None
    if start_positions is not None and end_positions is not None:
        loss = (cross_entropy(start_logits, start_positions)
                + cross_entropy(end_logits, end_positions)) / 2.0
    return loss, start_logits, end_logits


# ---------------------------------------------------------------------------
# Deterministic parameter init (synthetic; shapes implied by the module)
# ---------------------------------------------------------------------------
def init_params(key, *, vocab, type_vocab, max_pos, ctx_vocab, hid, n_layers, inter):
    keys = iter(jax.random.split(key, 128))

    def nrm(shape):
        return 0.02 * jax.random.normal(next(keys), shape, jnp.float32)

    params = dict(
        word_emb=nrm((vocab, hid)),
        pos_emb=nrm((max_pos, hid)),
        type_emb=nrm((type_vocab, hid)),
        ctx_emb=nrm((ctx_vocab, hid)),
        emb_ln_g=jnp.ones((1, hid), jnp.float32),
        emb_ln_b=jnp.zeros((1, hid), jnp.float32),
        start_vec=nrm((hid,)),
        end_vec=nrm((hid,)),
        layers=[],
    )
    for _ in range(n_layers):
        params["layers"].append(dict(
            wq=nrm((hid, hid)), bq=jnp.zeros((1, hid), jnp.float32),
            wk=nrm((hid, hid)), bk=jnp.zeros((1, hid), jnp.float32),
            wv=nrm((hid, hid)), bv=jnp.zeros((1, hid), jnp.float32),
            wo=nrm((hid, hid)), bo=jnp.zeros((1, hid), jnp.float32),
            ln1_g=jnp.ones((1, hid), jnp.float32), ln1_b=jnp.zeros((1, hid), jnp.float32),
            w1=nrm((hid, inter)), b1=jnp.zeros((1, inter), jnp.float32),
            w2=nrm((inter, hid)), b2=jnp.zeros((1, hid), jnp.float32),
            ln2_g=jnp.ones((1, hid), jnp.float32), ln2_b=jnp.zeros((1, hid), jnp.float32),
        ))
    return params


if __name__ == "__main__":
    B, S = 2, 32
    HID, HEADS, LAYERS, INTER = 32, 4, 2, 64
    VOCAB, TYPES, MAXPOS, CTX = 100, 2, 32, 6
    SEQ_TILE = 16   # 2 sequence tiles per batch element -> exercises the (B, Sq) grid

    key = jax.random.PRNGKey(0)
    pkey, k1, k2, k3, k4 = jax.random.split(key, 5)
    params = init_params(pkey, vocab=VOCAB, type_vocab=TYPES, max_pos=MAXPOS,
                         ctx_vocab=CTX, hid=HID, n_layers=LAYERS, inter=INTER)

    input_ids = jax.random.randint(k1, (B, S), 0, VOCAB)
    token_type_ids = jax.random.randint(k2, (B, S), 0, TYPES)
    context_ids = jax.random.randint(k3, (B, S), 0, CTX)
    attention_mask = (jax.random.uniform(k4, (B, S)) > 0.2).astype(jnp.int32)

    loss, start_logits, end_logits = free_slot_head_forward(
        params, input_ids, token_type_ids, context_ids, attention_mask,
        n_heads=HEADS, seq_tile=SEQ_TILE)
    jax.block_until_ready((start_logits, end_logits))
    assert start_logits.shape == (B, S) and end_logits.shape == (B, S)
    assert bool(jnp.all(jnp.isfinite(start_logits))) and bool(jnp.all(jnp.isfinite(end_logits)))
    print("KERNEL_OK")
</pallas_src>

<mosaic_0001>
module attributes {stable_mosaic.version = 11 : i64} {
  func.func @embed_kernel(%arg0: i32, %arg1: i32, %arg2: memref<1x16x32xf32, #tpu.memory_space<vmem>>, %arg3: memref<1x16x32xf32, #tpu.memory_space<vmem>>, %arg4: memref<1x32xf32, #tpu.memory_space<vmem>>, %arg5: memref<1x32xf32, #tpu.memory_space<vmem>>, %arg6: memref<1x16x32xf32, #tpu.memory_space<vmem>>) attributes {dimension_semantics = [#tpu.dimension_semantics<parallel>, #tpu.dimension_semantics<parallel>], iteration_bounds = array<i64: 2, 2>, scalar_prefetch = 0 : i64, scratch_operands = 0 : i64, tpu.core_type = #tpu.core_type<tc>, window_params = [{transform_indices = @transform_0, window_bounds = array<i64: 1, 16, 32>}, {transform_indices = @transform_1, window_bounds = array<i64: 1, 16, 32>}, {pipeline_mode = #tpu.pipeline_mode<synchronous>, transform_indices = @transform_2, window_bounds = array<i64: 1, 32>}, {pipeline_mode = #tpu.pipeline_mode<synchronous>, transform_indices = @transform_3, window_bounds = array<i64: 1, 32>}, {transform_indices = @transform_4, window_bounds = array<i64: 1, 16, 32>}]} {
    %c0 = arith.constant 0 : index
    %c0_0 = arith.constant 0 : index
    %c0_1 = arith.constant 0 : index
    %0 = vector.load %arg2[%c0, %c0_0, %c0_1] : memref<1x16x32xf32, #tpu.memory_space<vmem>>, vector<1x16x32xf32>
    %1 = vector.shape_cast %0 : vector<1x16x32xf32> to vector<16x32xf32>
    %c0_2 = arith.constant 0 : index
    %c0_3 = arith.constant 0 : index
    %c0_4 = arith.constant 0 : index
    %2 = vector.load %arg3[%c0_2, %c0_3, %c0_4] : memref<1x16x32xf32, #tpu.memory_space<vmem>>, vector<1x16x32xf32>
    %3 = vector.shape_cast %2 : vector<1x16x32xf32> to vector<16x32xf32>
    %c0_5 = arith.constant 0 : index
    %c0_6 = arith.constant 0 : index
    %4 = vector.load %arg4[%c0_5, %c0_6] : memref<1x32xf32, #tpu.memory_space<vmem>>, vector<1x32xf32>
    %5 = vector.shape_cast %4 : vector<1x32xf32> to vector<32xf32>
    %c0_7 = arith.constant 0 : index
    %c0_8 = arith.constant 0 : index
    %6 = vector.load %arg5[%c0_7, %c0_8] : memref<1x32xf32, #tpu.memory_space<vmem>>, vector<1x32xf32>
    %7 = vector.shape_cast %6 : vector<1x32xf32> to vector<32xf32>
    %cst = arith.constant dense<0.000000e+00> : vector<16xf32>
    %8 = vector.multi_reduction <add>, %1, %cst [1] : vector<16x32xf32> to vector<16xf32>
    %9 = vector.shape_cast %8 : vector<16xf32> to vector<16x1xf32>
    %cst_9 = arith.constant 3.200000e+01 : f32
    %10 = vector.broadcast %cst_9 : f32 to vector<16x1xf32>
    %11 = arith.divf %9, %10 : vector<16x1xf32>
    %12 = vector.broadcast %11 : vector<16x1xf32> to vector<16x32xf32>
    %13 = arith.subf %1, %12 : vector<16x32xf32>
    %14 = arith.mulf %13, %13 : vector<16x32xf32>
    %cst_10 = arith.constant dense<0.000000e+00> : vector<16xf32>
    %15 = vector.multi_reduction <add>, %14, %cst_10 [1] : vector<16x32xf32> to vector<16xf32>
    %16 = vector.shape_cast %15 : vector<16xf32> to vector<16x1xf32>
    %cst_11 = arith.constant 3.200000e+01 : f32
    %17 = vector.broadcast %cst_11 : f32 to vector<16x1xf32>
    %18 = arith.divf %16, %17 : vector<16x1xf32>
    %19 = vector.broadcast %11 : vector<16x1xf32> to vector<16x32xf32>
    %20 = arith.subf %1, %19 : vector<16x32xf32>
    %cst_12 = arith.constant 9.99999996E-13 : f32
    %21 = vector.broadcast %cst_12 : f32 to vector<16x1xf32>
    %22 = arith.addf %18, %21 : vector<16x1xf32>
    %23 = math.rsqrt %22 : vector<16x1xf32>
    %24 = vector.broadcast %23 : vector<16x1xf32> to vector<16x32xf32>
    %25 = arith.mulf %20, %24 : vector<16x32xf32>
    %26 = vector.shape_cast %5 : vector<32xf32> to vector<1x32xf32>
    %27 = vector.broadcast %26 : vector<1x32xf32> to vector<16x32xf32>
    %28 = arith.mulf %25, %27 : vector<16x32xf32>
    %29 = vector.shape_cast %7 : vector<32xf32> to vector<1x32xf32>
    %30 = vector.broadcast %29 : vector<1x32xf32> to vector<16x32xf32>
    %31 = arith.addf %28, %30 : vector<16x32xf32>
    %32 = arith.addf %31, %3 : vector<16x32xf32>
    %cst_13 = arith.constant dense<0.000000e+00> : vector<16xf32>
    %33 = vector.multi_reduction <add>, %32, %cst_13 [1] : vector<16x32xf32> to vector<16xf32>
    %34 = vector.shape_cast %33 : vector<16xf32> to vector<16x1xf32>
    %cst_14 = arith.constant 3.200000e+01 : f32
    %35 = vector.broadcast %cst_14 : f32 to vector<16x1xf32>
    %36 = arith.divf %34, %35 : vector<16x1xf32>
    %37 = vector.broadcast %36 : vector<16x1xf32> to vector<16x32xf32>
    %38 = arith.subf %32, %37 : vector<16x32xf32>
    %39 = arith.mulf %38, %38 : vector<16x32xf32>
    %cst_15 = arith.constant dense<0.000000e+00> : vector<16xf32>
    %40 = vector.multi_reduction <add>, %39, %cst_15 [1] : vector<16x32xf32> to vector<16xf32>
    %41 = vector.shape_cast %40 : vector<16xf32> to vector<16x1xf32>
    %cst_16 = arith.constant 3.200000e+01 : f32
    %42 = vector.broadcast %cst_16 : f32 to vector<16x1xf32>
    %43 = arith.divf %41, %42 : vector<16x1xf32>
    %44 = vector.broadcast %36 : vector<16x1xf32> to vector<16x32xf32>
    %45 = arith.subf %32, %44 : vector<16x32xf32>
    %cst_17 = arith.constant 9.99999996E-13 : f32
    %46 = vector.broadcast %cst_17 : f32 to vector<16x1xf32>
    %47 = arith.addf %43, %46 : vector<16x1xf32>
    %48 = math.rsqrt %47 : vector<16x1xf32>
    %49 = vector.broadcast %48 : vector<16x1xf32> to vector<16x32xf32>
    %50 = arith.mulf %45, %49 : vector<16x32xf32>
    %51 = vector.shape_cast %5 : vector<32xf32> to vector<1x32xf32>
    %52 = vector.broadcast %51 : vector<1x32xf32> to vector<16x32xf32>
    %53 = arith.mulf %50, %52 : vector<16x32xf32>
    %54 = vector.shape_cast %7 : vector<32xf32> to vector<1x32xf32>
    %55 = vector.broadcast %54 : vector<1x32xf32> to vector<16x32xf32>
    %56 = arith.addf %53, %55 : vector<16x32xf32>
    %c0_18 = arith.constant 0 : index
    %c0_19 = arith.constant 0 : index
    %c0_20 = arith.constant 0 : index
    %57 = vector.load %arg6[%c0_18, %c0_19, %c0_20] : memref<1x16x32xf32, #tpu.memory_space<vmem>>, vector<1x16x32xf32>
    %58 = vector.shape_cast %57 : vector<1x16x32xf32> to vector<16x32xf32>
    %59 = vector.shape_cast %56 : vector<16x32xf32> to vector<1x16x32xf32>
    tpu.vector_store %arg6[%c0_18, %c0_19, %c0_20], %59 {strides = array<i32>} : memref<1x16x32xf32, #tpu.memory_space<vmem>>, vector<1x16x32xf32>,
    return
  }
  func.func @transform_0(%arg0: i32, %arg1: i32) -> (i32, i32, i32) {
    %c0_i32 = arith.constant 0 : i32
    %c0_i32_0 = arith.constant 0 : i32
    return %arg0, %arg1, %c0_i32 : i32, i32, i32
  }
  func.func @transform_1(%arg0: i32, %arg1: i32) -> (i32, i32, i32) {
    %c0_i32 = arith.constant 0 : i32
    %c0_i32_0 = arith.constant 0 : i32
    return %arg0, %arg1, %c0_i32 : i32, i32, i32
  }
  func.func @transform_2(%arg0: i32, %arg1: i32) -> (i32, i32) {
    %c0_i32 = arith.constant 0 : i32
    %c0_i32_0 = arith.constant 0 : i32
    %c0_i32_1 = arith.constant 0 : i32
    return %c0_i32, %c0_i32_0 : i32, i32
  }
  func.func @transform_3(%arg0: i32, %arg1: i32) -> (i32, i32) {
    %c0_i32 = arith.constant 0 : i32
    %c0_i32_0 = arith.constant 0 : i32
    %c0_i32_1 = arith.constant 0 : i32
    return %c0_i32, %c0_i32_0 : i32, i32
  }
  func.func @transform_4(%arg0: i32, %arg1: i32) -> (i32, i32, i32) {
    %c0_i32 = arith.constant 0 : i32
    %c0_i32_0 = arith.constant 0 : i32
    return %arg0, %arg1, %c0_i32 : i32, i32, i32
  }
}

</mosaic_0001>

<bundles_post_ra>
// kernel: tpu_custom_call.1
= control target key start
LH: loop header
LB: loop body
LE: loop exit
PB: predicated region body
PF: predicated region fallthrough
CT: control target
= control target key end

     0   :  { %s1065_s0 = inlined_call_operand.hbm [shape: f32[2,32,32], index: 0, kind: input, shape index: {}]   ;;  %s1066_s1 = inlined_call_operand.hbm [shape: f32[2,32,32], index: 1, kind: input, shape index: {}]   ;;  %s1067_s2 = inlined_call_operand.vmem [shape: f32[1,32], index: 2, kind: input, shape index: {}]   ;;  %s1068_s3 = inlined_call_operand.vmem [shape: f32[1,32], index: 3, kind: input, shape index: {}]   ;;  %s1069_s4 = inlined_call_operand.hbm [shape: f32[2,32,32], index: 4, kind: output, shape index: {}]  }
   0x1   :  { %1074 = sst [smem:[#allocation15_spill]] %s1065_s0 }
   0x2   :  { %9 = vsyncpa [#allocation3], 0 }
   0x3   :  { %11 = vsyncpa [#allocation3 + $0x1], 0 }
   0x4   :  { %12 = vsyncpa [#allocation6], 0 }
   0x5   :  { %14 = vsyncpa [#allocation6 + $0x1], 0 }
   0x6   :  { %15 = vsyncpa [#allocation4], 0 }
   0x7   :  { %17 = vsyncpa [#allocation4 + $0x1], 0  ;;  %s855_s15 = smov 0   ;;  %s857_s16 = smov 0  }
   0x8   :  { %s859_s17 = smov 0   ;;  %s861_s18 = smov 0  }
   0x9   :  { %s863_s19 = smov 0   ;;  %s865_s20 = smov 0  }
   0xa   :  { %s867_s21 = smov 0   ;;  %s869_s22 = smov 0  }
   0xb LB: > { %1075 = sst [smem:[#allocation11_spill]] %s815_s20  ;;  %s539_s23 = sadd.s32 4294967295, %s823_s22   ;;  %s823_s22 = sphi %s869_s22, %s23_s22   ;;  %s819_s21 = sphi %s867_s21, %s1088_s21   ;;  %s815_s20 = sphi %s865_s20, %s1087_s20   ;;  %s811_s19 = sphi %s863_s19, %s1086_s19   ;;  %s807_s18 = sphi %s861_s18, %s1085_s18   ;;  %s803_s17 = sphi %s859_s17, %s1091_s17   ;;  %s799_s16 = sphi %s857_s16, %s1090_s16   ;;  %s795_s15 = sphi %s855_s15, %s1089_s15  }
   0xc   : > { %1076 = sst [smem:[#allocation12_spill]] %s819_s21  ;;  %s540_s24 = sadd.s32 4294967294, %s823_s22  }
   0xd   : > { %s32_s25 = sadd.s32 1, %s815_s20  ;;  %s35_s26 = sadd.s32 1, %s819_s21 }
   0xe   : > { %p33_p0 = scmp.ge.s32.totalorder %s32_s25, 2  ;;  %s44_s27 = sadd.s32 1, %s803_s17 }
   0xf   : > { %p51_p1 = scmp.ne.s32.totalorder %s803_s17, %s799_s16  ;;  %p52_p2 = scmp.eq.s32.totalorder %s823_s22, 0 }
  0x10   : > { %s1093_s25 = smov (%p33_p0, %s32_s25), 0  ;;  %s1095_s26 = smov (!%p33_p0, %s35_s26), %s819_s21 }
  0x11   : > { %1077 = sst [smem:[#allocation13_spill]] %s1093_s25  ;;  %s40_s28 = ssub.s32 %s815_s20, %s1093_s25 }
  0x12   : > { %p908_p3 = por %p52_p2, %p51_p1  ;;  %p37_p4 = scmp.ge.s32.totalorder %s1095_s26, 2 }
  0x13   : > { %p57_p5 = scmp.ne.s32.totalorder %s799_s16, %s795_s15  ;;  %p58_p6 = scmp.eq.s32.totalorder %s539_s23, 0 }
  0x14   : > { %p153_p7 = scmp.eq.s32.totalorder %s539_s23, 3  ;;  %s1097_s26 = smov (%p37_p4, %s1095_s26), 0 }
  0x15   : > { %1079 = sst [smem:[#allocation14_spill]] %s1097_s26  ;;  %p916_p8 = por %p58_p6, %p57_p5 }
  0x16   : > { %p920_p9 = por %p153_p7, %p51_p1  ;;  %s39_s6 = ssub.s32 %s819_s21, %s1097_s26 }
  0x17   : > { %p159_p10 = scmp.eq.s32.totalorder %s540_s24, 3  ;;  %s41_s7 = sor.u32 %s40_s28, %s39_s6 }
  0x18   : > { %p42_p11 = scmp.eq.s32.totalorder %s41_s7, 0  ;;  %p578_p13 = scmp.lt.s32.totalorder %s823_s22, 4 }
  0x19   : > { %p926_p12 = por %p159_p10, %p57_p5  ;;  %s932_s9 = sand.u32 1, %s803_s17  }
  0x1a   : > { %s935_s10 = scalar_select %p42_p11, %s803_s17, %s44_s27  }
  0x1b   : > { %s543_s11 = sshll.u32 %s932_s9, 4  ;;  %s544_s12 = sshll.u32 %s815_s20, 1 }
  0x1c   : > { %s545_s13 = sshll.u32 %s819_s21, 2  ;;  %s189_s14 = scalar_lea.vmem [#allocation2], %s543_s11 }
  0x1d   : > { %s199_s23 = sshll.u32 %s189_s14, 4  ;;  %s194_s24 = sadd.s32 %s545_s13, %s544_s12  ;;  %s200_s23 = int_to_ptr.vmem [resolvable:$true] %s199_s23 }
  0x1e   : > { %s546_s28 = sshll.u32 %s194_s24, 3  ;;  %p942_p0 = pnand %p578_p13, %p908_p3 }
  0x1f   : > { %s1084_s0 = sld [smem:[#allocation15_spill]]  ;;  %s186_s21 = scalar_lea.sflag [#allocation3], %s932_s9 }
  0x20   : > { %s825_s20 = smov 128   ;;  %s826_s14 = smov 8  }
  0x21   : > { %p551_p1 = scmp.ge.s32.totalorder %s823_s22, 1  ;;  %p231_p2 = scmp.lt.s32.totalorder %s823_s22, 5 }
  0x22   : > { %s220_s13 = scalar_lea.hbm %s1066_s1, %s546_s28  ;;  %s213_s26 = scalar_lea.vmem [#allocation5], %s543_s11 }
  0x23   : > { %p232_p3 = pnand %p551_p1, %p231_p2  ;;  %s221_s24 = sshll.u32 %s220_s13, 4  ;;  %s222_s24 = int_to_ptr.hbm [resolvable:$true] %s221_s24 }
  0x24   : > { %s223_s7 = sshll.u32 %s213_s26, 4  ;;  %s224_s7 = int_to_ptr.vmem [resolvable:$true] %s223_s7 }
  0x25   : > { %s196_s27 = scalar_lea.hbm %s1084_s0, %s546_s28  ;;  %235 = sbr.rel (%p232_p3) target bundleno = 598 (0x256), region = 36 }
  0x26   : > { %s197_s25 = sshll.u32 %s196_s27, 4  ;;  %s210_s27 = scalar_lea.sflag [#allocation6], %s932_s9  ;;  %s198_s25 = int_to_ptr.hbm [resolvable:$true] %s197_s25 }
  0x27   : > { %570 = dma.hbm_to_vmem [thread:$0]  (!%p942_p0), %s198_s25, 256, %s200_s23, %s186_s21, %s825_s20, %s825_s20, %s826_s14  }
  0x28   : > { %573 = dma.hbm_to_vmem [thread:$0]  (!%p942_p0), %s222_s24, 256, %s224_s7, %s210_s27, %s825_s20, %s825_s20, %s826_s14  }
  0x29   : > { %s961_s0 = sand.u32 (!%p232_p3), 1, %s799_s16  }
  0x2a   : > { %s964_s21 = sshll.u32 %s961_s0, 4  ;;  %s238_s25 = scalar_lea.sflag [#allocation3], %s961_s0 }
  0x2b   : > { %s241_s23 = scalar_lea.vmem [#allocation2], %s964_s21 }
  0x2c   : > { %782 = dma.done.wait (%p916_p8), %s238_s25, 256  }
  0x2d   : > { %784 = vsyncadd (%p916_p8), %s238_s25, 4294967040  ;;  %s248_s20 = scalar_lea.sflag [#allocation6], %s961_s0  ;;  %s251_s9 = scalar_lea.vmem [#allocation5], %s964_s21 }
  0x2e   : > { %786 = dma.done.wait (%p916_p8), %s248_s20, 256  }
  0x2f   : > { %788 = vsyncadd (%p916_p8), %s248_s20, 4294967040  ;;  %vm291_vm0 = vcmask 261120   ;;  %v285_v0 = vld [vmem:[%s241_s23] sm:$0xff]  ;;  %v286_v2 = vld [vmem:[%s241_s23 + $0x8] sm:$0xff]  ;;  %v827_v4 = vmov 32.0   ;;  %s556_s14 = sshll.u32 %s807_s18, 1 }
  0x30   : > { %v292_v1 = vsel %vm291_vm0, %v285_v0, 0.0  ;;  %v295_v3 = vsel %vm291_vm0, %v286_v2, 0.0  ;;  %651 = vrcp.f32 %v827_v4  ;;  %v991_v35 = vld [vmem:[%s1067_s2] ss:$0 sm:$0xff]  ;;  %v288_v51 = vld [vmem:[%s251_s9 + $0x8] sm:$0xff]  ;;  %s557_s29 = sshll.u32 %s811_s19, 2 }
  0x31   : > { %293 = vadd.xlane.f32.xlu0 %v292_v1  ;;  %v996_v39 = vld [vmem:[%s1068_s3] ss:$0 sm:$0xff]  ;;  %s417_s12 = sadd.s32 %s557_s29, %s556_s14  ;;  %s281_s26 = scalar_lea.vmem [#allocation7], %s964_s21 }
  0x32   : > { %v287_v43 = vld [vmem:[%s251_s9] sm:$0xff]  ;;  %s558_s13 = sshll.u32 %s417_s12, 3  ;;  %s420_s7 = sshll.u32 %s281_s26, 4  ;;  %s421_s7 = int_to_ptr.vmem [resolvable:$true] %s420_s7 }
  0x33   : > { %s419_s24 = scalar_lea.hbm %s1069_s4, %s558_s13  ;;  %s406_s25 = scalar_lea.sflag [#allocation4], %s961_s0 }
  0x34   : > { %s422_s27 = sshll.u32 %s419_s24, 4  ;;  %s741_s30 = scalar_lea.hbm %s1069_s4, 64  ;;  %s423_s27 = int_to_ptr.hbm [resolvable:$true] %s422_s27 }
  0x35   : > { %s735_s23 = sshra.s32 %s423_s27, 4  ;;  %s736_s23 = int_to_ptr.hbm [resolvable:$true] %s735_s23 }
  0x36   : > { %v652_v5 = vpop.eup %651  ;;  %s737_s20 = scalar_lea.hbm %s736_s23, 16  ;;  %p742_p7 = scmp.lt.s32.totalorder %s736_s23, %s1069_s4 }
  0x37   : > { %v299_v6 = vmul.f32 32.0, %v652_v5  ;;  %vm303_vm1 = vweird.f32 %v652_v5  ;;  %p738_p4 = scmp.ne.s32.totalorder %s736_s23, %s737_s20  ;;  %p743_p8 = scmp.lt.s32.totalorder %s741_s30, %s737_s20 }
  0x39   : > { %296 = vadd.xlane.f32.xlu0 %v295_v3  ;;  %v300_v7 = vsub.f32 1.0, %v299_v6  ;;  %p739_p5 = pnand %p738_p4, %p920_p9  ;;  %p744_p10 = por %p743_p8, %p742_p7 }
  0x3b   : > { %v301_v8 = vmul.f32 %v652_v5, %v300_v7  ;;  %p740_p6 = pneg %p739_p5 }
  0x3d   : > { %v302_v9 = vadd.f32 %v652_v5, %v301_v8  ;;  %p745_p11 = pnand %p744_p10, %p740_p6 }
  0x3f   : > { %v980_v10 = vsel %vm303_vm1, %v652_v5, %v302_v9 }
  0xa4   : > { %v294_v11 = vpop.xlane.xlu0 %293 }
  0xa5   : > { %v305_v12 = vmul.f32 %v980_v10, %v294_v11 }
  0xa7   : > { %v307_v13 = vsub.f32 %v285_v0, %v305_v12 }
  0xa9   : > { %v309_v14 = vmul.f32 %v307_v13, %v307_v13 }
  0xab   : > { %v311_v15 = vsel %vm291_vm0, %v309_v14, 0.0 }
  0xac   : > { %312 = vadd.xlane.f32.xlu1 %v311_v15  ;;  %v297_v16 = vpop.xlane.xlu0 %296 }
  0xad   : > { %v306_v17 = vmul.f32 %v980_v10, %v297_v16 }
  0xaf   : > { %v308_v18 = vsub.f32 %v286_v2, %v306_v17 }
  0xb1   : > { %v310_v19 = vmul.f32 %v308_v18, %v308_v18 }
  0xb3   : > { %v314_v20 = vsel %vm291_vm0, %v310_v19, 0.0 }
  0xb4   : > { %315 = vadd.xlane.f32.xlu1 %v314_v20 }
 0x11f   : > { %v313_v21 = vpop.xlane.xlu1 %312 }
 0x120   : > { %v317_v22 = vmul.f32 %v313_v21, %v980_v10 }
 0x122   : > { %v319_v23 = vadd.f32 1e-12, %v317_v22 }
 0x124   : > { %653 = vrsqrt.f32 %v319_v23  ;;  %vm327_vm3 = vweird.f32 %v319_v23 }
 0x127   : > { %v316_v24 = vpop.xlane.xlu1 %315 }
 0x128   : > { %v318_v25 = vmul.f32 %v316_v24, %v980_v10 }
 0x12a   : > { %v654_v26 = vpop.eup %653  ;;  %v320_v27 = vadd.f32 1e-12, %v318_v25 }
 0x12b   : > { %v322_v28 = vmul.f32 %v654_v26, %v319_v23  ;;  %vm328_vm2 = vweird.f32 %v654_v26 }
 0x12c   : > { %655 = vrsqrt.f32 %v320_v27  ;;  %vm329_vm4 = vmor %vm327_vm3, %vm328_vm2  ;;  %vm337_vm6 = vweird.f32 %v320_v27 }
 0x12d   : > { %v323_v29 = vmul.f32 %v654_v26, %v322_v28 }
 0x12f   : > { %v324_v30 = vmul.f32 0.5, %v323_v29 }
 0x131   : > { %v325_v31 = vsub.f32 1.5, %v324_v30 }
 0x132   : > { %v656_v32 = vpop.eup %655 }
 0x133   : > { %v326_v33 = vmul.f32 %v654_v26, %v325_v31  ;;  %v332_v34 = vmul.f32 %v656_v32, %v320_v27  ;;  %vm338_vm5 = vweird.f32 %v656_v32 }
 0x134   : > { %vm339_vm7 = vmor %vm337_vm6, %vm338_vm5 }
 0x135   : > { %v333_v36 = vmul.f32 %v656_v32, %v332_v34  ;;  %v330_v37 = vsel %vm329_vm4, %v654_v26, %v326_v33 }
 0x136   : > { %v341_v38 = vmul.f32 %v330_v37, %v307_v13 }
 0x137   : > { %v334_v40 = vmul.f32 0.5, %v333_v36 }
 0x138   : > { %v346_v41 = vmul.f32 %v991_v35, %v341_v38 }
 0x139   : > { %v335_v42 = vsub.f32 1.5, %v334_v40 }
 0x13a   : > { %v351_v44 = vadd.f32 %v996_v39, %v346_v41 }
 0x13b   : > { %v336_v45 = vmul.f32 %v656_v32, %v335_v42 }
 0x13c   : > { %v353_v46 = vadd.f32 %v351_v44, %v287_v43 }
 0x13d   : > { %v340_v47 = vsel %vm339_vm7, %v656_v32, %v336_v45 }
 0x13e   : > { %v355_v48 = vsel %vm291_vm0, %v353_v46, 0.0  ;;  %v342_v49 = vmul.f32 %v340_v47, %v308_v18 }
 0x13f   : > { %356 = vadd.xlane.f32.xlu2 %v355_v48 }
 0x140   : > { %v347_v50 = vmul.f32 %v991_v35, %v342_v49 }
 0x142   : > { %v352_v52 = vadd.f32 %v996_v39, %v347_v50 }
 0x144   : > { %v354_v53 = vadd.f32 %v352_v52, %v288_v51 }
 0x146   : > { %v358_v54 = vsel %vm291_vm0, %v354_v53, 0.0 }
 0x147   : > { %359 = vadd.xlane.f32.xlu2 %v358_v54 }
 0x1b2   : > { %v357_v55 = vpop.xlane.xlu2 %356 }
 0x1b3   : > { %v361_v56 = vmul.f32 %v357_v55, %v980_v10 }
 0x1b5   : > { %v363_v57 = vsub.f32 %v353_v46, %v361_v56 }
 0x1b7   : > { %v365_v58 = vmul.f32 %v363_v57, %v363_v57 }
 0x1b9   : > { %v367_v59 = vsel %vm291_vm0, %v365_v58, 0.0 }
 0x1ba   : > { %368 = vadd.xlane.f32.xlu0 %v367_v59  ;;  %v360_v60 = vpop.xlane.xlu2 %359 }
 0x1bb   : > { %v362_v61 = vmul.f32 %v360_v60, %v980_v10 }
 0x1bd   : > { %v364_v62 = vsub.f32 %v354_v53, %v362_v61 }
 0x1bf   : > { %v366_v63 = vmul.f32 %v364_v62, %v364_v62 }
 0x1c1   : > { %v370_v0 = vsel %vm291_vm0, %v366_v63, 0.0 }
 0x1c2   : > { %371 = vadd.xlane.f32.xlu1 %v370_v0 }
 0x22d   : > { %v369_v1 = vpop.xlane.xlu0 %368 }
 0x22e   : > { %v373_v2 = vmul.f32 %v369_v1, %v980_v10 }
 0x230   : > { %v375_v3 = vadd.f32 1e-12, %v373_v2 }
 0x232   : > { %657 = vrsqrt.f32 %v375_v3  ;;  %vm383_vm9 = vweird.f32 %v375_v3 }
 0x235   : > { %v372_v4 = vpop.xlane.xlu1 %371 }
 0x236   : > { %v374_v5 = vmul.f32 %v372_v4, %v980_v10 }
 0x238   : > { %v658_v6 = vpop.eup %657  ;;  %v376_v7 = vadd.f32 1e-12, %v374_v5 }
 0x239   : > { %v378_v8 = vmul.f32 %v658_v6, %v375_v3  ;;  %vm384_vm8 = vweird.f32 %v658_v6 }
 0x23a   : > { %659 = vrsqrt.f32 %v376_v7  ;;  %vm385_vm10 = vmor %vm383_vm9, %vm384_vm8  ;;  %vm393_vm12 = vweird.f32 %v376_v7 }
 0x23b   : > { %v379_v9 = vmul.f32 %v658_v6, %v378_v8 }
 0x23d   : > { %v380_v11 = vmul.f32 0.5, %v379_v9 }
 0x23f   : > { %v381_v12 = vsub.f32 1.5, %v380_v11 }
 0x240   : > { %v660_v13 = vpop.eup %659 }
 0x241   : > { %v382_v14 = vmul.f32 %v658_v6, %v381_v12  ;;  %v388_v15 = vmul.f32 %v660_v13, %v376_v7  ;;  %vm394_vm11 = vweird.f32 %v660_v13 }
 0x242   : > { %vm395_vm13 = vmor %vm393_vm12, %vm394_vm11 }
 0x243   : > { %v386_v16 = vsel %vm385_vm10, %v658_v6, %v382_v14  ;;  %v389_v17 = vmul.f32 %v660_v13, %v388_v15 }
 0x244   : > { %v397_v10 = vmul.f32 %v386_v16, %v363_v57 }
 0x245   : > { %v390_v18 = vmul.f32 0.5, %v389_v17 }
 0x246   : > { %v399_v19 = vmul.f32 %v991_v35, %v397_v10 }
 0x247   : > { %v391_v20 = vsub.f32 1.5, %v390_v18 }
 0x248   : > { %v401_v21 = vadd.f32 %v996_v39, %v399_v19 }
 0x249   : > { %v392_v22 = vmul.f32 %v660_v13, %v391_v20 }
 0x24a   : > { %403 = vst.msk [vmem:[%s281_s26] sm:$0xff] %vm291_vm0, %v401_v21 }
 0x24b   : > { %v396_v23 = vsel %vm395_vm13, %v660_v13, %v392_v22 }
 0x24c   : > { %v398_v24 = vmul.f32 %v396_v23, %v364_v62 }
 0x24e   : > { %v400_v25 = vmul.f32 %v991_v35, %v398_v24 }
 0x250   : > { %v402_v26 = vadd.f32 %v996_v39, %v400_v25 }
 0x252   : > { %404 = vst.msk [vmem:[%s281_s26 + $0x8] sm:$0xff] %vm291_vm0, %v402_v26 }
 0x253   : > { %748 = shalt.err (!%p745_p11)
}
 0x254   : > { %s828_s0 = smov 128   ;;  %s829_s6 = smov 8  }
 0x255   : > { %565 = dma.vmem_to_hbm [thread:$0]  (%p920_p9), %s421_s7, 256, %s423_s27, %s406_s25, %s828_s0, %s828_s0, %s829_s6  }
 0x256 PF: > { %p579_p13 = scmp.ge.s32.totalorder %s823_s22, 2  ;;  %s437_s14 = sand.u32 1, %s795_s15  }
 0x257   : > { %s438_s29 = scalar_lea.sflag [#allocation4], %s437_s14 }
 0x258   : > { %p575_p0 = pnand %p579_p13, %p926_p12 }
 0x25a   : > { %p576_p1 = pneg %p575_p0 }
 0x25c   : > { %790 = dma.done.wait (%p576_p1), %s438_s29, 256  }
 0x25d   : > { %792 = vsyncadd (%p576_p1), %s438_s29, 4294967040  ;;  %s23_s22 = sadd.s32 1, %s823_s22   ;;  %s1085_s18 = sld [smem:[#allocation11_spill]] }
 0x25e   : > { %p20_p2 = scmp.ge.s32.totalorder %s23_s22, 6   ;;  %s1086_s19 = sld [smem:[#allocation12_spill]] }
 0x25f   : > { %s1087_s20 = sld [smem:[#allocation13_spill]]  ;;  %s1089_s15 = smov %s799_s16 }
 0x260   : > { %s1088_s21 = sld [smem:[#allocation14_spill]]  ;;  %s1090_s16 = smov %s803_s17 }
 0x261   : > { %s1091_s17 = smov %s935_s10  ;;  %22 = sbr.rel (!%p20_p2) target bundleno = 11 (0xb), region = 94 }
 0x266   :  { %444 = vsyncpa [#allocation3], 1 }
 0x267   :  { %446 = vsyncpa [#allocation3 + $0x1], 1 }
 0x268   :  { %447 = vsyncpa [#allocation6], 1 }
 0x269   :  { %449 = vsyncpa [#allocation6 + $0x1], 1 }
 0x26a   :  { %450 = vsyncpa [#allocation4], 1 }
 0x26b   :  { %452 = vsyncpa [#allocation4 + $0x1], 1 }

</bundles_post_ra>
